<compile_context>
chip_gen: v7x
topology: tpu7x:2x2x1
jax: 0.10.0
libtpu: 0.0.40
codegen_flags: <defaults>
</compile_context>

<pallas_src>
import jax
import jax.numpy as jnp
from jax.experimental import pallas as pl
from jax.experimental.pallas import tpu as pltpu

_NEG_BIG = -1e30  # padded-logit bias (f32): exp(_NEG_BIG - max) underflows to exactly 0.0


def policy_kernel(x_ref, w1_ref, b1_ref, w2_ref, b2_ref, w3_ref, b3_ref, o_ref):
    # fc1 + relu (f32 accumulation on the MXU regardless of streaming dtype)
    h1 = jnp.dot(x_ref[...], w1_ref[...], preferred_element_type=jnp.float32)
    h1 = jnp.maximum(h1 + b1_ref[...], 0.0)
    # fc2 + relu
    h2 = jnp.dot(h1.astype(w2_ref.dtype), w2_ref[...],
                 preferred_element_type=jnp.float32)
    h2 = jnp.maximum(h2 + b2_ref[...], 0.0)
    # out head, lane-padded to 128 cols *inside the kernel only*; padded columns
    # carry a -1e30 f32 bias so they contribute exactly 0 to max/sum/softmax.
    logits = jnp.dot(h2.astype(w3_ref.dtype), w3_ref[...],
                     preferred_element_type=jnp.float32) + b3_ref[...]
    m = jnp.max(logits, axis=-1, keepdims=True)
    e = jnp.exp(logits - m)
    s = jnp.sum(e, axis=-1, keepdims=True)
    probs = e / s  # exact divide (negligible cost; keeps 1e-5 tolerance)
    # Store only the real action columns -> narrow, dense-in-HBM writeback.
    n = o_ref.shape[-1]
    o_ref[...] = probs[:, :n].astype(o_ref.dtype)


def _round_up(n, m):
    return ((n + m - 1) // m) * m


def prepare_params(params, *, compute_dtype=jnp.float32):
    """One-time kernel-ready parameter prep (padding + dtype casts).

    params: dict with w1 (input_dim,64), b1 (1,64), w2 (64,32), b2 (1,32),
            w3 (32,num_actions), b3 (1,num_actions)  (weights stored (in,out)).
    """
    h2_dim = params["w2"].shape[1]
    num_actions = params["w3"].shape[1]
    n_pad = _round_up(max(num_actions, 128), 128)

    # Lane-padded output head (internal to the kernel): zero weights,
    # -1e30 f32 bias on the padded columns.
    w3p = jnp.zeros((h2_dim, n_pad), jnp.float32).at[:, :num_actions].set(
        params["w3"].astype(jnp.float32))
    b3p = jnp.full((1, n_pad), _NEG_BIG, jnp.float32).at[:, :num_actions].set(
        params["b3"].astype(jnp.float32))

    return {
        "w1": params["w1"].astype(compute_dtype),
        "b1": params["b1"].astype(jnp.float32),
        "w2": params["w2"].astype(compute_dtype),
        "b2": params["b2"].astype(jnp.float32),
        "w3p": w3p.astype(compute_dtype),
        "b3p": b3p,                      # bias stays f32 (keeps -1e30 exact)
        "num_actions": num_actions,
        "compute_dtype": compute_dtype,
    }


def policy_network_forward(x, prepped, *, tb_max=4096, out_dtype=jnp.float32):
    """PolicyNetwork forward as one batch-tiled Pallas kernel.

    x: (B, input_dim) float32
    prepped: output of prepare_params (call once, reuse across forwards)
    returns: (B, num_actions) softmax probabilities in `out_dtype`
    """
    B, input_dim = x.shape
    cd = prepped["compute_dtype"]
    w1, b1 = prepped["w1"], prepped["b1"]
    w2, b2 = prepped["w2"], prepped["b2"]
    w3p, b3p = prepped["w3p"], prepped["b3p"]
    h1_dim = w1.shape[1]
    h2_dim = w2.shape[1]
    n_pad = w3p.shape[1]
    num_actions = prepped["num_actions"]

    xs = x.astype(cd)

    # Batch tiling: multiples of 16 rows (covers f32 & bf16 sublane tiling).
    # Aim for >=2 grid steps when the batch allows so the "parallel" axis can
    # shard across v7x's 2 TensorCores; balance tiles to minimize padding.
    b16 = _round_up(max(B, 16), 16)
    nsteps = max(pl.cdiv(b16, tb_max), 2 if b16 >= 32 else 1)
    tb = _round_up(pl.cdiv(b16, nsteps), 16)
    b_pad = _round_up(B, tb)
    if b_pad != B:
        xs = jnp.pad(xs, ((0, b_pad - B), (0, 0)))
    grid = (b_pad // tb,)

    out = pl.pallas_call(
        policy_kernel,
        out_shape=jax.ShapeDtypeStruct((b_pad, num_actions), out_dtype),
        grid=grid,
        in_specs=[
            pl.BlockSpec((tb, input_dim), lambda i: (i, 0)),      # x: streamed per tile
            pl.BlockSpec((input_dim, h1_dim), lambda i: (0, 0)),  # weights/biases:
            pl.BlockSpec((1, h1_dim), lambda i: (0, 0)),          # constant block index
            pl.BlockSpec((h1_dim, h2_dim), lambda i: (0, 0)),     # -> DMA'd once,
            pl.BlockSpec((1, h2_dim), lambda i: (0, 0)),          #    stay VMEM-resident
            pl.BlockSpec((h2_dim, n_pad), lambda i: (0, 0)),
            pl.BlockSpec((1, n_pad), lambda i: (0, 0)),
        ],
        # Narrow output block: last dim == full array dim -> contiguous HBM tile.
        out_specs=pl.BlockSpec((tb, num_actions), lambda i: (i, 0)),
        compiler_params=pltpu.CompilerParams(
            dimension_semantics=("parallel",),
            vmem_limit_bytes=32 * 1024 * 1024),
    )(xs, w1, b1, w2, b2, w3p, b3p)

    return out[:B]


def init_params(key, input_dim, num_actions):
    """Deterministic synthetic init mirroring the PyTorch module's shapes."""
    k1, k2, k3, k4, k5, k6 = jax.random.split(key, 6)

    def uniform(k, shape, fan_in):
        bound = 1.0 / jnp.sqrt(fan_in)
        return jax.random.uniform(k, shape, jnp.float32, -bound, bound)

    return {
        # stored as (in, out) == transpose of PyTorch's (out, in)
        "w1": uniform(k1, (input_dim, 64), input_dim),
        "b1": uniform(k2, (1, 64), input_dim),
        "w2": uniform(k3, (64, 32), 64),
        "b2": uniform(k4, (1, 32), 64),
        "w3": uniform(k5, (32, num_actions), 32),
        "b3": uniform(k6, (1, num_actions), 32),
    }


def reference_forward(x, p):
    h1 = jnp.maximum(x @ p["w1"] + p["b1"], 0.0)
    h2 = jnp.maximum(h1 @ p["w2"] + p["b2"], 0.0)
    logits = h2 @ p["w3"] + p["b3"]
    return jax.nn.softmax(logits, axis=-1)


if __name__ == "__main__":
    key = jax.random.PRNGKey(0)
    k_x, k_p = jax.random.split(key)

    B, input_dim, num_actions = 8, 32, 8
    x = jax.random.normal(k_x, (B, input_dim), jnp.float32)
    params = init_params(k_p, input_dim, num_actions)

    # One-time parameter prep (padding + casts) — reused across all forwards.
    prepped = prepare_params(params)

    # f32 path: must match the reference tightly.
    out = jax.block_until_ready(policy_network_forward(x, prepped))
    ref = reference_forward(x, params)
    assert out.shape == (B, num_actions)
    assert jnp.allclose(out, ref, atol=1e-5, rtol=1e-5)
    assert jnp.allclose(jnp.sum(out, axis=-1), 1.0, atol=1e-5)

    # Multi-tile grid (batch not a multiple of the tile) exercises the
    # pipelined batch loop, the >=2-step grid split, and batch padding.
    B2 = 1000
    x2 = jax.random.normal(k_x, (B2, input_dim), jnp.float32)
    out2 = jax.block_until_ready(policy_network_forward(x2, prepped, tb_max=256))
    ref2 = reference_forward(x2, params)
    assert out2.shape == (B2, num_actions)
    assert jnp.allclose(out2, ref2, atol=1e-5, rtol=1e-5)
    assert jnp.allclose(jnp.sum(out2, axis=-1), 1.0, atol=1e-5)

    # bf16 streaming path (halves the dominant HBM read); looser tolerance.
    prepped_bf = prepare_params(params, compute_dtype=jnp.bfloat16)
    out_bf = jax.block_until_ready(
        policy_network_forward(x2, prepped_bf, tb_max=256))
    assert jnp.allclose(out_bf, ref2, atol=5e-2)
    assert jnp.allclose(jnp.sum(out_bf, axis=-1), 1.0, atol=1e-3)

    print("KERNEL_OK")
</pallas_src>

<mosaic_0001>
module attributes {stable_mosaic.version = 11 : i64} {
  func.func @policy_kernel(%arg0: i32, %arg1: memref<16x32xf32, #tpu.memory_space<vmem>>, %arg2: memref<32x64xf32, #tpu.memory_space<vmem>>, %arg3: memref<1x64xf32, #tpu.memory_space<vmem>>, %arg4: memref<64x32xf32, #tpu.memory_space<vmem>>, %arg5: memref<1x32xf32, #tpu.memory_space<vmem>>, %arg6: memref<32x128xf32, #tpu.memory_space<vmem>>, %arg7: memref<1x128xf32, #tpu.memory_space<vmem>>, %arg8: memref<16x8xf32, #tpu.memory_space<vmem>>) attributes {dimension_semantics = [#tpu.dimension_semantics<parallel>], iteration_bounds = array<i64: 1>, scalar_prefetch = 0 : i64, scratch_operands = 0 : i64, tpu.core_type = #tpu.core_type<tc>, window_params = [{transform_indices = @transform_0, window_bounds = array<i64: 16, 32>}, {pipeline_mode = #tpu.pipeline_mode<synchronous>, transform_indices = @transform_1, window_bounds = array<i64: 32, 64>}, {pipeline_mode = #tpu.pipeline_mode<synchronous>, transform_indices = @transform_2, window_bounds = array<i64: 1, 64>}, {pipeline_mode = #tpu.pipeline_mode<synchronous>, transform_indices = @transform_3, window_bounds = array<i64: 64, 32>}, {pipeline_mode = #tpu.pipeline_mode<synchronous>, transform_indices = @transform_4, window_bounds = array<i64: 1, 32>}, {pipeline_mode = #tpu.pipeline_mode<synchronous>, transform_indices = @transform_5, window_bounds = array<i64: 32, 128>}, {pipeline_mode = #tpu.pipeline_mode<synchronous>, transform_indices = @transform_6, window_bounds = array<i64: 1, 128>}, {transform_indices = @transform_7, window_bounds = array<i64: 16, 8>}]} {
    %c0 = arith.constant 0 : index
    %c0_0 = arith.constant 0 : index
    %0 = vector.load %arg1[%c0, %c0_0] : memref<16x32xf32, #tpu.memory_space<vmem>>, vector<16x32xf32>
    %c0_1 = arith.constant 0 : index
    %c0_2 = arith.constant 0 : index
    %1 = vector.load %arg2[%c0_1, %c0_2] : memref<32x64xf32, #tpu.memory_space<vmem>>, vector<32x64xf32>
    %cst = arith.constant dense<0.000000e+00> : vector<16x64xf32>
    %2 = tpu.matmul %0, %1, %cst {dimension_numbers = #tpu.dot_dimension_numbers<[1], [0], [0], [1], [0, 0, 1, 1], [], []>} : vector<16x32xf32>, vector<32x64xf32>, vector<16x64xf32> -> vector<16x64xf32>
    %c0_3 = arith.constant 0 : index
    %c0_4 = arith.constant 0 : index
    %3 = vector.load %arg3[%c0_3, %c0_4] : memref<1x64xf32, #tpu.memory_space<vmem>>, vector<1x64xf32>
    %4 = vector.broadcast %3 : vector<1x64xf32> to vector<16x64xf32>
    %5 = arith.addf %2, %4 : vector<16x64xf32>
    %cst_5 = arith.constant 0.000000e+00 : f32
    %6 = vector.broadcast %cst_5 : f32 to vector<16x64xf32>
    %7 = arith.maximumf %5, %6 : vector<16x64xf32>
    %c0_6 = arith.constant 0 : index
    %c0_7 = arith.constant 0 : index
    %8 = vector.load %arg4[%c0_6, %c0_7] : memref<64x32xf32, #tpu.memory_space<vmem>>, vector<64x32xf32>
    %cst_8 = arith.constant dense<0.000000e+00> : vector<16x32xf32>
    %9 = tpu.matmul %7, %8, %cst_8 {dimension_numbers = #tpu.dot_dimension_numbers<[1], [0], [0], [1], [0, 0, 1, 1], [], []>} : vector<16x64xf32>, vector<64x32xf32>, vector<16x32xf32> -> vector<16x32xf32>
    %c0_9 = arith.constant 0 : index
    %c0_10 = arith.constant 0 : index
    %10 = vector.load %arg5[%c0_9, %c0_10] : memref<1x32xf32, #tpu.memory_space<vmem>>, vector<1x32xf32>
    %11 = vector.broadcast %10 : vector<1x32xf32> to vector<16x32xf32>
    %12 = arith.addf %9, %11 : vector<16x32xf32>
    %cst_11 = arith.constant 0.000000e+00 : f32
    %13 = vector.broadcast %cst_11 : f32 to vector<16x32xf32>
    %14 = arith.maximumf %12, %13 : vector<16x32xf32>
    %c0_12 = arith.constant 0 : index
    %c0_13 = arith.constant 0 : index
    %15 = vector.load %arg6[%c0_12, %c0_13] : memref<32x128xf32, #tpu.memory_space<vmem>>, vector<32x128xf32>
    %cst_14 = arith.constant dense<0.000000e+00> : vector<16x128xf32>
    %16 = tpu.matmul %14, %15, %cst_14 {dimension_numbers = #tpu.dot_dimension_numbers<[1], [0], [0], [1], [0, 0, 1, 1], [], []>} : vector<16x32xf32>, vector<32x128xf32>, vector<16x128xf32> -> vector<16x128xf32>
    %c0_15 = arith.constant 0 : index
    %c0_16 = arith.constant 0 : index
    %17 = vector.load %arg7[%c0_15, %c0_16] : memref<1x128xf32, #tpu.memory_space<vmem>>, vector<1x128xf32>
    %18 = vector.broadcast %17 : vector<1x128xf32> to vector<16x128xf32>
    %19 = arith.addf %16, %18 : vector<16x128xf32>
    %cst_17 = arith.constant dense<0xFF800000> : vector<16xf32>
    %20 = vector.multi_reduction <maximumf>, %19, %cst_17 [1] : vector<16x128xf32> to vector<16xf32>
    %21 = vector.shape_cast %20 : vector<16xf32> to vector<16x1xf32>
    %22 = vector.broadcast %21 : vector<16x1xf32> to vector<16x128xf32>
    %23 = arith.subf %19, %22 : vector<16x128xf32>
    %24 = math.exp %23 : vector<16x128xf32>
    %cst_18 = arith.constant dense<0.000000e+00> : vector<16xf32>
    %25 = vector.multi_reduction <add>, %24, %cst_18 [1] : vector<16x128xf32> to vector<16xf32>
    %26 = vector.shape_cast %25 : vector<16xf32> to vector<16x1xf32>
    %27 = vector.broadcast %26 : vector<16x1xf32> to vector<16x128xf32>
    %28 = arith.divf %24, %27 : vector<16x128xf32>
    %29 = vector.extract_strided_slice %28 {offsets = [0, 0], sizes = [16, 8], strides = [1, 1]} : vector<16x128xf32> to vector<16x8xf32>
    %c0_19 = arith.constant 0 : index
    %c0_20 = arith.constant 0 : index
    %30 = vector.load %arg8[%c0_19, %c0_20] : memref<16x8xf32, #tpu.memory_space<vmem>>, vector<16x8xf32>
    tpu.vector_store %arg8[%c0_19, %c0_20], %29 {strides = array<i32>} : memref<16x8xf32, #tpu.memory_space<vmem>>, vector<16x8xf32>,
    return
  }
  func.func @transform_0(%arg0: i32) -> (i32, i32) {
    %c0_i32 = arith.constant 0 : i32
    %c0_i32_0 = arith.constant 0 : i32
    return %arg0, %c0_i32 : i32, i32
  }
  func.func @transform_1(%arg0: i32) -> (i32, i32) {
    %c0_i32 = arith.constant 0 : i32
    %c0_i32_0 = arith.constant 0 : i32
    %c0_i32_1 = arith.constant 0 : i32
    return %c0_i32, %c0_i32_0 : i32, i32
  }
  func.func @transform_2(%arg0: i32) -> (i32, i32) {
    %c0_i32 = arith.constant 0 : i32
    %c0_i32_0 = arith.constant 0 : i32
    %c0_i32_1 = arith.constant 0 : i32
    return %c0_i32, %c0_i32_0 : i32, i32
  }
  func.func @transform_3(%arg0: i32) -> (i32, i32) {
    %c0_i32 = arith.constant 0 : i32
    %c0_i32_0 = arith.constant 0 : i32
    %c0_i32_1 = arith.constant 0 : i32
    return %c0_i32, %c0_i32_0 : i32, i32
  }
  func.func @transform_4(%arg0: i32) -> (i32, i32) {
    %c0_i32 = arith.constant 0 : i32
    %c0_i32_0 = arith.constant 0 : i32
    %c0_i32_1 = arith.constant 0 : i32
    return %c0_i32, %c0_i32_0 : i32, i32
  }
  func.func @transform_5(%arg0: i32) -> (i32, i32) {
    %c0_i32 = arith.constant 0 : i32
    %c0_i32_0 = arith.constant 0 : i32
    %c0_i32_1 = arith.constant 0 : i32
    return %c0_i32, %c0_i32_0 : i32, i32
  }
  func.func @transform_6(%arg0: i32) -> (i32, i32) {
    %c0_i32 = arith.constant 0 : i32
    %c0_i32_0 = arith.constant 0 : i32
    %c0_i32_1 = arith.constant 0 : i32
    return %c0_i32, %c0_i32_0 : i32, i32
  }
  func.func @transform_7(%arg0: i32) -> (i32, i32) {
    %c0_i32 = arith.constant 0 : i32
    %c0_i32_0 = arith.constant 0 : i32
    return %arg0, %c0_i32 : i32, i32
  }
}

</mosaic_0001>

<bundles_post_ra>
// kernel: tpu_custom_call.1
= control target key start
LH: loop header
LB: loop body
LE: loop exit
PB: predicated region body
PF: predicated region fallthrough
CT: control target
= control target key end

     0   :  { %vm39_vm0 = vcmask 261120   ;;  %vm138_vm1 = vcmask 523264   ;;  %vm332_vm2 = vcmask 64512   ;;  %s564_s1 = inlined_call_operand.vmem [shape: f32[32,64], index: 1, kind: input, shape index: {}]   ;;  %s565_s0 = inlined_call_operand.vmem [shape: f32[16,32], index: 0, kind: input, shape index: {}]   ;;  %s566_s3 = inlined_call_operand.vmem [shape: f32[64,32], index: 3, kind: input, shape index: {}]   ;;  %s567_s5 = inlined_call_operand.vmem [shape: f32[32,128], index: 5, kind: input, shape index: {}]   ;;  %s568_s2 = inlined_call_operand.vmem [shape: f32[1,64], index: 2, kind: input, shape index: {}]   ;;  %s569_s4 = inlined_call_operand.vmem [shape: f32[1,32], index: 4, kind: input, shape index: {}]   ;;  %s570_s6 = inlined_call_operand.vmem [shape: f32[1,128], index: 6, kind: input, shape index: {}]   ;;  %s571_s7 = inlined_call_operand.vmem [shape: f32[16,8], index: 7, kind: output, shape index: {}]  }
   0x1   :  { %v28_v0 = vld [vmem:[%s564_s1] sm:$0xff]  ;;  %v29_v1 = vld [vmem:[%s564_s1 + $0x8] sm:$0xff]  ;;  %v30_v2 = vld [vmem:[%s564_s1 + $0x10] sm:$0xff] }
   0x2   :  { %v411_v3 = vpack.c.bf16 %v29_v1, %v28_v0  ;;  %v31_v4 = vld [vmem:[%s564_s1 + $0x18] sm:$0xff]  ;;  %v26_v5 = vld [vmem:[%s565_s0] sm:$0xff]  ;;  %v124_v8 = vld [vmem:[%s566_s3 + $0x8] sm:$0xff] }
   0x3   :  { %v415_v6 = vpack.c.bf16 %v31_v4, %v30_v2  ;;  %378 = vmatprep.mubr.msk.f32.mxu0 %vm39_vm0, %v26_v5  ;;  %v123_v7 = vld [vmem:[%s566_s3] sm:$0xff]  ;;  %v125_v9 = vld [vmem:[%s566_s3 + $0x10] sm:$0xff]  ;;  %v126_v11 = vld [vmem:[%s566_s3 + $0x18] sm:$0xff] }
   0x4   :  { %412 = vmatprep.subr.bf16.mxu0 %v411_v3  ;;  %v419_v10 = vpack.c.bf16 %v124_v8, %v123_v7  ;;  %v423_v12 = vpack.c.bf16 %v126_v11, %v125_v9  ;;  %v127_v13 = vld [vmem:[%s566_s3 + $0x20] sm:$0xff]  ;;  %v128_v14 = vld [vmem:[%s566_s3 + $0x28] sm:$0xff]  ;;  %v129_v17 = vld [vmem:[%s566_s3 + $0x30] sm:$0xff] }
   0x5   :  { %414 = vmatpush3.bf16.msra.mxu0 %v411_v3  ;;  %v427_v15 = vpack.c.bf16 %v128_v14, %v127_v13  ;;  %v27_v16 = vld [vmem:[%s565_s0 + $0x8] sm:$0xff]  ;;  %v130_v18 = vld [vmem:[%s566_s3 + $0x38] sm:$0xff]  ;;  %v222_v20 = vld [vmem:[%s567_s5] sm:$0xff] }
   0x6   :  { %416 = vmatprep.subr.bf16.mxu0 %v415_v6  ;;  %420 = vmatprep.subr.bf16.mxu1 %v419_v10  ;;  %v431_v19 = vpack.c.bf16 %v130_v18, %v129_v17  ;;  %v223_v21 = vld [vmem:[%s567_s5 + $0x8] sm:$0xff]  ;;  %v339_v23 = vld [vmem:[%s568_s2] ss:$0 sm:$0xff]  ;;  %v224_v30 = vld [vmem:[%s567_s5 + $0x10] sm:$0xff] }
   0x7   :  { %422 = vmatpush3.bf16.msra.mxu1 %v419_v10  ;;  %v435_v22 = vpack.c.bf16 %v223_v21, %v222_v20  ;;  %v225_v31 = vld [vmem:[%s567_s5 + $0x18] sm:$0xff]  ;;  %v342_v33 = vld [vmem:[%s569_s4] ss:$0 sm:$0xff] }
   0x8   :  { %424 = vmatprep.subr.bf16.mxu1 %v423_v12  ;;  %v439_v32 = vpack.c.bf16 %v225_v31, %v224_v30  ;;  %v345_v40 = vld [vmem:[%s570_s6] ss:$0 sm:$0xff] }
   0x9   :  { %418 = vmatpush3.bf16.msra.mxu0 %v415_v6 }
   0xa   :  { %436 = vmatprep.subr.bf16.mxu0 %v435_v22 }
   0xb   :  { %426 = vmatpush3.bf16.msra.mxu1 %v423_v12 }
   0xc   :  { %379 = vmatmul.mubr.msk.f32.vlgmr.msra.gmra.mrb[0].mxu0 %vm39_vm0, %v27_v16  ;;  %428 = vmatprep.subr.bf16.mxu1 %v427_v15 }
   0xd   :  { %438 = vmatpush3.bf16.msra.mxu0 %v435_v22 }
   0xe   :  { %440 = vmatprep.subr.bf16.mxu0 %v439_v32 }
   0xf   :  { %430 = vmatpush3.bf16.msra.mxu1 %v427_v15 }
  0x10   :  { %432 = vmatprep.subr.bf16.mxu1 %v431_v19 }
  0x11   :  { %442 = vmatpush3.bf16.msra.mxu0 %v439_v32 }
  0x13   :  { %434 = vmatpush3.bf16.msra.mxu1 %v431_v19 }
  0xdf   :  { %v380_v24 = vpop.f32.mrb[0].mxu0 }
  0xe0   :  { %v118_v25 = vadd.f32 %v380_v24, %v339_v23  ;;  %v112_v26 = vpop.f32.mrb[1].mxu0 }
  0xe1   :  { %v113_v27 = vadd.f32 %v339_v23, %v112_v26 }
  0xe2   :  { %v122_v29 = vmax.f32 %v118_v25, 0.0 }
  0xe3   :  { %v121_v28 = vmax.f32 %v113_v27, 0.0 }
  0xe5   :  { %397 = vmatprep.mubr.msk.f32.mxu1 %vm138_vm1, %v121_v28 }
  0xe6   :  { %398 = vmatmul.mubr.msk.f32.vlgmr.msra.gmra.mrb[0].mxu1 %vm138_vm1, %v122_v29 }
 0x1b9   :  { %v399_v34 = vpop.f32.mrb[0].mxu1 }
 0x1ba   :  { %v217_v35 = vadd.f32 %v399_v34, %v342_v33  ;;  %v211_v36 = vpop.f32.mrb[1].mxu1 }
 0x1bb   :  { %v212_v37 = vadd.f32 %v342_v33, %v211_v36 }
 0x1bc   :  { %v221_v39 = vmax.f32 %v217_v35, 0.0 }
 0x1bd   :  { %v220_v38 = vmax.f32 %v212_v37, 0.0 }
 0x1bf   :  { %408 = vmatprep.mubr.msk.f32.mxu0 %vm39_vm0, %v220_v38 }
 0x1c0   :  { %409 = vmatmul.mubr.msk.f32.vlgmr.msra.gmra.mrb[2].mxu0 %vm39_vm0, %v221_v39 }
 0x293   :  { %v410_v41 = vpop.f32.mrb[2].mxu0 }
 0x294   :  { %v305_v42 = vpop.f32.mrb[3].mxu0  ;;  %v311_v44 = vadd.f32 %v410_v41, %v345_v40 }
 0x295   :  { %v306_v43 = vadd.f32 %v345_v40, %v305_v42 }
 0x297   :  { %314 = vmax.xlane.f32.xlu0 %v306_v43 }
 0x29b   :  { %316 = vmax.xlane.f32.xlu0 %v311_v44 }
 0x324   :  { %v315_v45 = vpop.xlane.xlu0 %314 }
 0x325   :  { %v318_v46 = vsub.f32 %v306_v43, %v315_v45 }
 0x327   :  { %v320_v47 = vmul.f32 1.442695, %v318_v46 }
 0x328   :  { %v317_v48 = vpop.xlane.xlu0 %316 }
 0x329   :  { %443 = vpow2.f32 %v320_v47  ;;  %v319_v49 = vsub.f32 %v311_v44, %v317_v48 }
 0x32b   :  { %v322_v50 = vmul.f32 1.442695, %v319_v49 }
 0x32d   :  { %445 = vpow2.f32 %v322_v50 }
 0x333   :  { %v444_v51 = vpop.eup %443 }
 0x334   :  { %324 = vadd.xlane.f32.xlu1 %v444_v51 }
 0x337   :  { %v446_v52 = vpop.eup %445 }
 0x338   :  { %326 = vadd.xlane.f32.xlu1 %v446_v52 }
 0x3c1   :  { %v325_v53 = vpop.xlane.xlu1 %324 }
 0x3c2   :  { %447 = vrcp.f32 %v325_v53 }
 0x3c5   :  { %v327_v54 = vpop.xlane.xlu1 %326 }
 0x3c6   :  { %449 = vrcp.f32 %v327_v54 }
 0x3cc   :  { %v448_v55 = vpop.eup %447 }
 0x3cd   :  { %v329_v56 = vmul.f32 %v448_v55, %v444_v51 }
 0x3cf   :  { %333 = vst.msk [vmem:[%s571_s7] sm:$0xff] %vm332_vm2, %v329_v56 }
 0x3d0   :  { %v450_v57 = vpop.eup %449 }
 0x3d1   :  { %v331_v58 = vmul.f32 %v450_v57, %v446_v52 }
 0x3d3   :  { %334 = vst.msk [vmem:[%s571_s7 + $0x8] sm:$0xff] %vm332_vm2, %v331_v58 }

</bundles_post_ra>
